<compile_context>
chip_gen: v6e
topology: v6e:2x2x1
jax: 0.10.0
libtpu: 0.0.40
codegen_flags: <defaults>
</compile_context>

<pallas_src>
import functools

import jax
import jax.numpy as jnp
from jax import lax
from jax.experimental import pallas as pl
from jax.experimental.pallas import tpu as pltpu

EPS = 1e-5
LANES = 128
DEFAULT_TM = 256                      # M-tile (rows of the im2col matmul)
VMEM_LIMIT_BYTES = 32 * 1024 * 1024   # explicit scoped-VMEM limit (safe on v5e..v7x)


def _round_up(x, m):
    return (x + m - 1) // m * m


def _pad2d(a, rows, cols):
    r, c = a.shape
    return jnp.pad(a, ((0, rows - r), (0, cols - c)))


# ----------------------------- Pallas kernels ------------------------------ #

def _matmul_stats_kernel(cols_ref, w_ref, y_ref, stats_ref, sum_acc, sq_acc):
    """Pass 1: y = cols @ w (bf16 operands, f32 accum); accumulate per-channel
    sum and sum-of-squares across the M-tile grid axis.

    Grid = (Cout-tiles, M-tiles); M is the last ("arbitrary") axis.  Partial sums
    are kept as (8, tn) VPU accumulators; the cross-sublane reduction to (1, tn)
    happens only once, on the last M-tile."""
    mt = pl.program_id(1)

    @pl.when(mt == 0)
    def _():
        sum_acc[...] = jnp.zeros_like(sum_acc)
        sq_acc[...] = jnp.zeros_like(sq_acc)

    y = jnp.dot(cols_ref[...], w_ref[...], preferred_element_type=jnp.float32)
    y_ref[...] = y

    tm, tn = y.shape
    ps = jnp.zeros((8, tn), jnp.float32)
    pq = jnp.zeros((8, tn), jnp.float32)
    # Sublane-group accumulation: pure VPU adds, no per-tile XLU reduction.
    for i in range(tm // 8):
        blk = y[8 * i:8 * (i + 1), :]
        ps = ps + blk
        pq = pq + blk * blk
    sum_acc[...] += ps
    sq_acc[...] += pq

    @pl.when(mt == pl.num_programs(1) - 1)
    def _():
        stats_ref[...] = jnp.concatenate(
            [jnp.sum(sum_acc[...], axis=0, keepdims=True),
             jnp.sum(sq_acc[...], axis=0, keepdims=True)], axis=0)


def _bn_kernel(*refs, m_total, relu, res_mode):
    """Pass 2: normalize with batch stats, * gamma + beta, optional residual
    (res_mode: 'none' | 'raw' identity | 'bn' 1x1-projection), optional ReLU."""
    if res_mode == "bn":
        (y_ref, st_ref, g_ref, b_ref,
         r_ref, rst_ref, rg_ref, rb_ref, out_ref) = refs
    elif res_mode == "raw":
        y_ref, st_ref, g_ref, b_ref, r_ref, out_ref = refs
    else:
        y_ref, st_ref, g_ref, b_ref, out_ref = refs

    inv_m = 1.0 / float(m_total)   # divide by the TRUE row count (padding-safe)

    def norm(y, st_ref, g_ref, b_ref):
        st = st_ref[...]                       # (2, tn): [sum; sum_sq]
        mean = st[0:1, :] * inv_m
        var = st[1:2, :] * inv_m - mean * mean  # biased variance, f32
        inv_std = lax.rsqrt(jnp.maximum(var, 0.0) + EPS)
        return (y - mean) * (inv_std * g_ref[...]) + b_ref[...]

    out = norm(y_ref[...], st_ref, g_ref, b_ref)
    if res_mode == "bn":
        out = out + norm(r_ref[...], rst_ref, rg_ref, rb_ref)
    elif res_mode == "raw":
        out = out + r_ref[...].astype(jnp.float32)
    if relu:
        out = jnp.maximum(out, 0.0)
    out_ref[...] = out.astype(out_ref.dtype)


# ------------------------------ Pallas wrappers ----------------------------- #

def _pick_tn(cp):
    # v6e/v7x MXU is 2x256^2 -> prefer tn=256 when Cout allows; 128 otherwise
    # (also the right width for v5e's 4x128^2 MXU).
    return 256 if cp % 256 == 0 else 128


def conv_matmul_stats(cols, w_mat, tm):
    """Pass 1: tiled (Mp,Kp)@(Kp,Cp) matmul + per-channel sum/sum_sq stats."""
    mp, kp = cols.shape
    _, cp = w_mat.shape
    tn = _pick_tn(cp)
    n_mt = mp // tm
    n_ct = cp // tn

    y, stats = pl.pallas_call(
        _matmul_stats_kernel,
        out_shape=(jax.ShapeDtypeStruct((mp, cp), jnp.float32),
                   jax.ShapeDtypeStruct((2, cp), jnp.float32)),
        grid=(n_ct, n_mt),
        in_specs=[
            pl.BlockSpec((tm, kp), lambda ct, mt: (mt, 0)),
            pl.BlockSpec((kp, tn), lambda ct, mt: (0, ct)),
        ],
        out_specs=(
            pl.BlockSpec((tm, tn), lambda ct, mt: (mt, ct)),
            pl.BlockSpec((2, tn), lambda ct, mt: (0, ct)),
        ),
        scratch_shapes=[pltpu.VMEM((8, tn), jnp.float32),
                        pltpu.VMEM((8, tn), jnp.float32)],
        compiler_params=pltpu.CompilerParams(
            dimension_semantics=("parallel", "arbitrary"),
            vmem_limit_bytes=VMEM_LIMIT_BYTES),
    )(cols, w_mat)
    return y, stats


def bn_norm(y, stats, gamma, beta, m_true, tm, *, relu,
            residual=None, res_stats=None, res_gamma=None, res_beta=None):
    """Pass 2: tiled normalize (+ optional residual) (+ optional ReLU)."""
    mp, cp = y.shape
    tn = _pick_tn(cp)
    n_mt = mp // tm
    n_ct = cp // tn

    row_spec = pl.BlockSpec((tm, tn), lambda mt, ct: (mt, ct))
    ch2_spec = pl.BlockSpec((2, tn), lambda mt, ct: (0, ct))
    ch1_spec = pl.BlockSpec((1, tn), lambda mt, ct: (0, ct))

    if residual is None:
        res_mode = "none"
        inputs = (y, stats, gamma, beta)
        in_specs = [row_spec, ch2_spec, ch1_spec, ch1_spec]
    elif res_stats is None:
        res_mode = "raw"
        inputs = (y, stats, gamma, beta, residual)
        in_specs = [row_spec, ch2_spec, ch1_spec, ch1_spec, row_spec]
    else:
        res_mode = "bn"
        inputs = (y, stats, gamma, beta, residual, res_stats, res_gamma, res_beta)
        in_specs = [row_spec, ch2_spec, ch1_spec, ch1_spec,
                    row_spec, ch2_spec, ch1_spec, ch1_spec]

    kernel = functools.partial(_bn_kernel, m_total=m_true, relu=relu,
                               res_mode=res_mode)
    return pl.pallas_call(
        kernel,
        out_shape=jax.ShapeDtypeStruct((mp, cp), jnp.float32),
        grid=(n_mt, n_ct),
        in_specs=in_specs,
        out_specs=row_spec,
        compiler_params=pltpu.CompilerParams(
            dimension_semantics=("parallel", "parallel"),
            vmem_limit_bytes=VMEM_LIMIT_BYTES),
    )(*inputs)


# ------------------------------- JAX glue ---------------------------------- #

def im2col(x_nhwc, ksize, stride, pad):
    """Extract kH*kW patches -> (N*Ho*Wo, kH*kW*C), patch order (ky, kx, c)."""
    n, h, w, c = x_nhwc.shape
    xp = jnp.pad(x_nhwc, ((0, 0), (pad, pad), (pad, pad), (0, 0)))
    ho = (h + 2 * pad - ksize) // stride + 1
    wo = (w + 2 * pad - ksize) // stride + 1
    patches = []
    for ky in range(ksize):
        for kx in range(ksize):
            patches.append(
                xp[:, ky:ky + stride * ho:stride, kx:kx + stride * wo:stride, :])
    cols = jnp.concatenate(patches, axis=-1)  # (N, Ho, Wo, k*k*C)
    return cols.reshape(n * ho * wo, ksize * ksize * c), ho, wo


def w_oihw_to_mat(w_oihw):
    """(Cout, Cin, kH, kW) -> (kH*kW*Cin, Cout), matching im2col ordering."""
    cout, cin, kh, kw = w_oihw.shape
    return jnp.transpose(w_oihw, (2, 3, 1, 0)).reshape(kh * kw * cin, cout)


def residual_block_forward(x_nchw, params, stride):
    """Pallas implementation of ResidualBlock.forward (input/output NCHW)."""
    x = jnp.transpose(x_nchw, (0, 2, 3, 1)).astype(jnp.float32)  # -> NHWC
    n, h, w, cin = x.shape
    planes = params["w1"].shape[0]
    x_bf = x.astype(jnp.bfloat16)       # bf16 MXU operands / im2col storage

    cp = _round_up(planes, LANES)       # lane-dense output channels

    def prep_gb(g, b):
        return (_pad2d(g.reshape(1, -1).astype(jnp.float32), 1, cp),
                _pad2d(b.reshape(1, -1).astype(jnp.float32), 1, cp))

    def prep_w(w_oihw):
        wm = w_oihw_to_mat(w_oihw).astype(jnp.float32)
        kp = _round_up(wm.shape[0], LANES)
        return _pad2d(wm, kp, cp).astype(jnp.bfloat16), kp

    # ---- conv1 (3x3, stride) + bn1 + relu ----
    cols1, ho, wo = im2col(x_bf, 3, stride, 1)
    m = n * ho * wo
    tm = DEFAULT_TM if m >= DEFAULT_TM else _round_up(m, 8)
    mp = _round_up(m, tm)

    w1m, k1p = prep_w(params["w1"])
    y1, st1 = conv_matmul_stats(_pad2d(cols1, mp, k1p), w1m, tm)
    g1, b1 = prep_gb(params["g1"], params["b1"])
    out1 = bn_norm(y1, st1, g1, b1, m, tm, relu=True)
    out1_nhwc = out1[:m, :planes].reshape(n, ho, wo, planes)

    # ---- conv2 (3x3, stride 1): matmul + stats ----
    cols2, _, _ = im2col(out1_nhwc.astype(jnp.bfloat16), 3, 1, 1)
    w2m, k2p = prep_w(params["w2"])
    y2, st2 = conv_matmul_stats(_pad2d(cols2, mp, k2p), w2m, tm)
    g2, b2 = prep_gb(params["g2"], params["b2"])

    # ---- shortcut + fused bn2 / add / relu (pass 2) ----
    if stride != 1 or cin != planes:
        xs = x_bf[:, ::stride, ::stride, :].reshape(m, cin)
        wsm, ksp = prep_w(params["ws"])
        ysc, stsc = conv_matmul_stats(_pad2d(xs, mp, ksp), wsm, tm)
        gs, bs = prep_gb(params["gs"], params["bs"])
        out = bn_norm(y2, st2, g2, b2, m, tm, relu=True,
                      residual=ysc, res_stats=stsc, res_gamma=gs, res_beta=bs)
    else:
        res = _pad2d(x.reshape(m, cin), mp, cp)   # identity residual (f32)
        out = bn_norm(y2, st2, g2, b2, m, tm, relu=True, residual=res)

    out = out[:m, :planes].reshape(n, ho, wo, planes)
    return jnp.transpose(out, (0, 3, 1, 2))  # -> NCHW


# ----------------------------- pure-JAX reference --------------------------- #

def _ref_conv(x_nchw, w_oihw, stride, pad, operand_dtype):
    return lax.conv_general_dilated(
        x_nchw.astype(operand_dtype), w_oihw.astype(operand_dtype),
        (stride, stride), [(pad, pad), (pad, pad)],
        dimension_numbers=("NCHW", "OIHW", "NCHW"),
        preferred_element_type=jnp.float32)


def _ref_bn(y_nchw, gamma, beta):
    mean = jnp.mean(y_nchw, axis=(0, 2, 3), keepdims=True)
    var = jnp.mean(jnp.square(y_nchw - mean), axis=(0, 2, 3), keepdims=True)
    yhat = (y_nchw - mean) * lax.rsqrt(var + EPS)
    return yhat * gamma.reshape(1, -1, 1, 1) + beta.reshape(1, -1, 1, 1)


def residual_block_reference(x_nchw, params, stride, operand_dtype=jnp.float32):
    cin = x_nchw.shape[1]
    planes = params["w1"].shape[0]
    out = jnp.maximum(
        _ref_bn(_ref_conv(x_nchw, params["w1"], stride, 1, operand_dtype),
                params["g1"], params["b1"]), 0.0)
    out = _ref_bn(_ref_conv(out, params["w2"], 1, 1, operand_dtype),
                  params["g2"], params["b2"])
    if stride != 1 or cin != planes:
        sc = _ref_bn(_ref_conv(x_nchw, params["ws"], stride, 0, operand_dtype),
                     params["gs"], params["bs"])
    else:
        sc = x_nchw
    return jnp.maximum(out + sc, 0.0)


# ---------------------------------- main ------------------------------------ #

def make_params(key, in_planes, planes, stride):
    ks = jax.random.split(key, 8)
    p = {
        "w1": 0.1 * jax.random.normal(ks[0], (planes, in_planes, 3, 3), jnp.float32),
        "g1": 1.0 + 0.1 * jax.random.normal(ks[1], (planes,), jnp.float32),
        "b1": 0.1 * jax.random.normal(ks[2], (planes,), jnp.float32),
        "w2": 0.1 * jax.random.normal(ks[3], (planes, planes, 3, 3), jnp.float32),
        "g2": 1.0 + 0.1 * jax.random.normal(ks[4], (planes,), jnp.float32),
        "b2": 0.1 * jax.random.normal(ks[5], (planes,), jnp.float32),
    }
    if stride != 1 or in_planes != planes:
        p["ws"] = 0.1 * jax.random.normal(ks[6], (planes, in_planes, 1, 1), jnp.float32)
        p["gs"] = 1.0 + 0.1 * jax.random.normal(ks[7], (planes,), jnp.float32)
        p["bs"] = 0.05 * jnp.ones((planes,), jnp.float32)
    return p


def _check(out, x, params, stride):
    # Tight check vs a reference with matched (bf16) MXU-operand precision.
    ref_bf = residual_block_reference(x, params, stride, jnp.bfloat16)
    assert jnp.allclose(out, ref_bf, atol=5e-3, rtol=5e-3), "mismatch vs matched-precision ref"
    # Coarse sanity check vs the pure-f32 reference (bf16 operands -> ~1e-2 level).
    ref_f32 = residual_block_reference(x, params, stride, jnp.float32)
    assert float(jnp.mean(jnp.abs(out - ref_f32))) < 2.5e-2, "too far from f32 ref"


if __name__ == "__main__":
    key = jax.random.PRNGKey(0)
    kx, kp1, kp2 = jax.random.split(key, 3)

    N, Cin, H, W = 2, 4, 16, 16
    x = jax.random.normal(kx, (N, Cin, H, W), jnp.float32)
    fwd = jax.jit(residual_block_forward, static_argnums=(2,))

    # Config A: downsampling block (stride=2, channel change -> 1x1 shortcut).
    planes, stride = 8, 2
    params = make_params(kp1, Cin, planes, stride)
    out = jax.block_until_ready(fwd(x, params, stride))
    assert out.shape == (N, planes, H // stride, W // stride)
    _check(out, x, params, stride)

    # Config B: identity-shortcut block (stride=1, same channels, multi M-tile).
    planes_b, stride_b = Cin, 1
    params_b = make_params(kp2, Cin, planes_b, stride_b)
    out_b = jax.block_until_ready(fwd(x, params_b, stride_b))
    assert out_b.shape == (N, planes_b, H, W)
    _check(out_b, x, params_b, stride_b)

    print("KERNEL_OK")
</pallas_src>

<mosaic_0001>
module attributes {stable_mosaic.version = 11 : i64} {
  func.func @_matmul_stats_kernel(%arg0: i32, %arg1: i32, %arg2: memref<128x128xbf16, #tpu.memory_space<vmem>>, %arg3: memref<128x128xbf16, #tpu.memory_space<vmem>>, %arg4: memref<128x128xf32, #tpu.memory_space<vmem>>, %arg5: memref<2x128xf32, #tpu.memory_space<vmem>>, %arg6: memref<8x128xf32, #tpu.memory_space<vmem>>, %arg7: memref<8x128xf32, #tpu.memory_space<vmem>>) attributes {dimension_semantics = [#tpu.dimension_semantics<parallel>, #tpu.dimension_semantics<arbitrary>], iteration_bounds = array<i64: 1, 1>, scalar_prefetch = 0 : i64, scratch_operands = 2 : i64, tpu.core_type = #tpu.core_type<tc>, window_params = [{transform_indices = @transform_0, window_bounds = array<i64: 128, 128>}, {transform_indices = @transform_1, window_bounds = array<i64: 128, 128>}, {transform_indices = @transform_2, window_bounds = array<i64: 128, 128>}, {transform_indices = @transform_3, window_bounds = array<i64: 2, 128>}]} {
    %c0_i32 = arith.constant 0 : i32
    %0 = arith.cmpi eq, %arg1, %c0_i32 : i32
    %1 = arith.extui %0 : i1 to i32
    %c0_i32_0 = arith.constant 0 : i32
    %2 = arith.cmpi ne, %1, %c0_i32_0 : i32
    scf.if %2 {
      %cst_18 = arith.constant 0.000000e+00 : f32
      %82 = vector.broadcast %cst_18 : f32 to vector<8x128xf32>
      %c0_19 = arith.constant 0 : index
      %c0_20 = arith.constant 0 : index
      %83 = vector.load %arg6[%c0_19, %c0_20] : memref<8x128xf32, #tpu.memory_space<vmem>>, vector<8x128xf32>
      tpu.vector_store %arg6[%c0_19, %c0_20], %82 {strides = array<i32>} : memref<8x128xf32, #tpu.memory_space<vmem>>, vector<8x128xf32>,
      %cst_21 = arith.constant 0.000000e+00 : f32
      %84 = vector.broadcast %cst_21 : f32 to vector<8x128xf32>
      %c0_22 = arith.constant 0 : index
      %c0_23 = arith.constant 0 : index
      %85 = vector.load %arg7[%c0_22, %c0_23] : memref<8x128xf32, #tpu.memory_space<vmem>>, vector<8x128xf32>
      tpu.vector_store %arg7[%c0_22, %c0_23], %84 {strides = array<i32>} : memref<8x128xf32, #tpu.memory_space<vmem>>, vector<8x128xf32>,
    } else {
    }
    %c0 = arith.constant 0 : index
    %c0_1 = arith.constant 0 : index
    %3 = vector.load %arg2[%c0, %c0_1] : memref<128x128xbf16, #tpu.memory_space<vmem>>, vector<128x128xbf16>
    %c0_2 = arith.constant 0 : index
    %c0_3 = arith.constant 0 : index
    %4 = vector.load %arg3[%c0_2, %c0_3] : memref<128x128xbf16, #tpu.memory_space<vmem>>, vector<128x128xbf16>
    %cst = arith.constant dense<0.000000e+00> : vector<128x128xf32>
    %5 = tpu.matmul %3, %4, %cst {dimension_numbers = #tpu.dot_dimension_numbers<[1], [0], [0], [1], [0, 0, 1, 1], [], []>} : vector<128x128xbf16>, vector<128x128xbf16>, vector<128x128xf32> -> vector<128x128xf32>
    %c0_4 = arith.constant 0 : index
    %c0_5 = arith.constant 0 : index
    %6 = vector.load %arg4[%c0_4, %c0_5] : memref<128x128xf32, #tpu.memory_space<vmem>>, vector<128x128xf32>
    tpu.vector_store %arg4[%c0_4, %c0_5], %5 {strides = array<i32>} : memref<128x128xf32, #tpu.memory_space<vmem>>, vector<128x128xf32>,
    %cst_6 = arith.constant 0.000000e+00 : f32
    %7 = vector.broadcast %cst_6 : f32 to vector<8x128xf32>
    %cst_7 = arith.constant 0.000000e+00 : f32
    %8 = vector.broadcast %cst_7 : f32 to vector<8x128xf32>
    %9 = vector.extract_strided_slice %5 {offsets = [0, 0], sizes = [8, 128], strides = [1, 1]} : vector<128x128xf32> to vector<8x128xf32>
    %10 = arith.addf %7, %9 : vector<8x128xf32>
    %11 = arith.mulf %9, %9 : vector<8x128xf32>
    %12 = arith.addf %8, %11 : vector<8x128xf32>
    %13 = vector.extract_strided_slice %5 {offsets = [8, 0], sizes = [8, 128], strides = [1, 1]} : vector<128x128xf32> to vector<8x128xf32>
    %14 = arith.addf %10, %13 : vector<8x128xf32>
    %15 = arith.mulf %13, %13 : vector<8x128xf32>
    %16 = arith.addf %12, %15 : vector<8x128xf32>
    %17 = vector.extract_strided_slice %5 {offsets = [16, 0], sizes = [8, 128], strides = [1, 1]} : vector<128x128xf32> to vector<8x128xf32>
    %18 = arith.addf %14, %17 : vector<8x128xf32>
    %19 = arith.mulf %17, %17 : vector<8x128xf32>
    %20 = arith.addf %16, %19 : vector<8x128xf32>
    %21 = vector.extract_strided_slice %5 {offsets = [24, 0], sizes = [8, 128], strides = [1, 1]} : vector<128x128xf32> to vector<8x128xf32>
    %22 = arith.addf %18, %21 : vector<8x128xf32>
    %23 = arith.mulf %21, %21 : vector<8x128xf32>
    %24 = arith.addf %20, %23 : vector<8x128xf32>
    %25 = vector.extract_strided_slice %5 {offsets = [32, 0], sizes = [8, 128], strides = [1, 1]} : vector<128x128xf32> to vector<8x128xf32>
    %26 = arith.addf %22, %25 : vector<8x128xf32>
    %27 = arith.mulf %25, %25 : vector<8x128xf32>
    %28 = arith.addf %24, %27 : vector<8x128xf32>
    %29 = vector.extract_strided_slice %5 {offsets = [40, 0], sizes = [8, 128], strides = [1, 1]} : vector<128x128xf32> to vector<8x128xf32>
    %30 = arith.addf %26, %29 : vector<8x128xf32>
    %31 = arith.mulf %29, %29 : vector<8x128xf32>
    %32 = arith.addf %28, %31 : vector<8x128xf32>
    %33 = vector.extract_strided_slice %5 {offsets = [48, 0], sizes = [8, 128], strides = [1, 1]} : vector<128x128xf32> to vector<8x128xf32>
    %34 = arith.addf %30, %33 : vector<8x128xf32>
    %35 = arith.mulf %33, %33 : vector<8x128xf32>
    %36 = arith.addf %32, %35 : vector<8x128xf32>
    %37 = vector.extract_strided_slice %5 {offsets = [56, 0], sizes = [8, 128], strides = [1, 1]} : vector<128x128xf32> to vector<8x128xf32>
    %38 = arith.addf %34, %37 : vector<8x128xf32>
    %39 = arith.mulf %37, %37 : vector<8x128xf32>
    %40 = arith.addf %36, %39 : vector<8x128xf32>
    %41 = vector.extract_strided_slice %5 {offsets = [64, 0], sizes = [8, 128], strides = [1, 1]} : vector<128x128xf32> to vector<8x128xf32>
    %42 = arith.addf %38, %41 : vector<8x128xf32>
    %43 = arith.mulf %41, %41 : vector<8x128xf32>
    %44 = arith.addf %40, %43 : vector<8x128xf32>
    %45 = vector.extract_strided_slice %5 {offsets = [72, 0], sizes = [8, 128], strides = [1, 1]} : vector<128x128xf32> to vector<8x128xf32>
    %46 = arith.addf %42, %45 : vector<8x128xf32>
    %47 = arith.mulf %45, %45 : vector<8x128xf32>
    %48 = arith.addf %44, %47 : vector<8x128xf32>
    %49 = vector.extract_strided_slice %5 {offsets = [80, 0], sizes = [8, 128], strides = [1, 1]} : vector<128x128xf32> to vector<8x128xf32>
    %50 = arith.addf %46, %49 : vector<8x128xf32>
    %51 = arith.mulf %49, %49 : vector<8x128xf32>
    %52 = arith.addf %48, %51 : vector<8x128xf32>
    %53 = vector.extract_strided_slice %5 {offsets = [88, 0], sizes = [8, 128], strides = [1, 1]} : vector<128x128xf32> to vector<8x128xf32>
    %54 = arith.addf %50, %53 : vector<8x128xf32>
    %55 = arith.mulf %53, %53 : vector<8x128xf32>
    %56 = arith.addf %52, %55 : vector<8x128xf32>
    %57 = vector.extract_strided_slice %5 {offsets = [96, 0], sizes = [8, 128], strides = [1, 1]} : vector<128x128xf32> to vector<8x128xf32>
    %58 = arith.addf %54, %57 : vector<8x128xf32>
    %59 = arith.mulf %57, %57 : vector<8x128xf32>
    %60 = arith.addf %56, %59 : vector<8x128xf32>
    %61 = vector.extract_strided_slice %5 {offsets = [104, 0], sizes = [8, 128], strides = [1, 1]} : vector<128x128xf32> to vector<8x128xf32>
    %62 = arith.addf %58, %61 : vector<8x128xf32>
    %63 = arith.mulf %61, %61 : vector<8x128xf32>
    %64 = arith.addf %60, %63 : vector<8x128xf32>
    %65 = vector.extract_strided_slice %5 {offsets = [112, 0], sizes = [8, 128], strides = [1, 1]} : vector<128x128xf32> to vector<8x128xf32>
    %66 = arith.addf %62, %65 : vector<8x128xf32>
    %67 = arith.mulf %65, %65 : vector<8x128xf32>
    %68 = arith.addf %64, %67 : vector<8x128xf32>
    %69 = vector.extract_strided_slice %5 {offsets = [120, 0], sizes = [8, 128], strides = [1, 1]} : vector<128x128xf32> to vector<8x128xf32>
    %70 = arith.addf %66, %69 : vector<8x128xf32>
    %71 = arith.mulf %69, %69 : vector<8x128xf32>
    %72 = arith.addf %68, %71 : vector<8x128xf32>
    %c0_8 = arith.constant 0 : index
    %c0_9 = arith.constant 0 : index
    %73 = vector.load %arg6[%c0_8, %c0_9] : memref<8x128xf32, #tpu.memory_space<vmem>>, vector<8x128xf32>
    %74 = arith.addf %73, %70 : vector<8x128xf32>
    %c0_10 = arith.constant 0 : index
    %c0_11 = arith.constant 0 : index
    %75 = vector.load %arg6[%c0_10, %c0_11] : memref<8x128xf32, #tpu.memory_space<vmem>>, vector<8x128xf32>
    tpu.vector_store %arg6[%c0_10, %c0_11], %74 {strides = array<i32>} : memref<8x128xf32, #tpu.memory_space<vmem>>, vector<8x128xf32>,
    %c0_12 = arith.constant 0 : index
    %c0_13 = arith.constant 0 : index
    %76 = vector.load %arg7[%c0_12, %c0_13] : memref<8x128xf32, #tpu.memory_space<vmem>>, vector<8x128xf32>
    %77 = arith.addf %76, %72 : vector<8x128xf32>
    %c0_14 = arith.constant 0 : index
    %c0_15 = arith.constant 0 : index
    %78 = vector.load %arg7[%c0_14, %c0_15] : memref<8x128xf32, #tpu.memory_space<vmem>>, vector<8x128xf32>
    tpu.vector_store %arg7[%c0_14, %c0_15], %77 {strides = array<i32>} : memref<8x128xf32, #tpu.memory_space<vmem>>, vector<8x128xf32>,
    %c0_i32_16 = arith.constant 0 : i32
    %79 = arith.cmpi eq, %arg1, %c0_i32_16 : i32
    %80 = arith.extui %79 : i1 to i32
    %c0_i32_17 = arith.constant 0 : i32
    %81 = arith.cmpi ne, %80, %c0_i32_17 : i32
    scf.if %81 {
      %c0_18 = arith.constant 0 : index
      %c0_19 = arith.constant 0 : index
      %82 = vector.load %arg6[%c0_18, %c0_19] : memref<8x128xf32, #tpu.memory_space<vmem>>, vector<8x128xf32>
      %cst_20 = arith.constant dense<0.000000e+00> : vector<128xf32>
      %83 = vector.multi_reduction <add>, %82, %cst_20 [0] : vector<8x128xf32> to vector<128xf32>
      %84 = vector.shape_cast %83 : vector<128xf32> to vector<1x128xf32>
      %c0_21 = arith.constant 0 : index
      %c0_22 = arith.constant 0 : index
      %85 = vector.load %arg7[%c0_21, %c0_22] : memref<8x128xf32, #tpu.memory_space<vmem>>, vector<8x128xf32>
      %cst_23 = arith.constant dense<0.000000e+00> : vector<128xf32>
      %86 = vector.multi_reduction <add>, %85, %cst_23 [0] : vector<8x128xf32> to vector<128xf32>
      %87 = vector.shape_cast %86 : vector<128xf32> to vector<1x128xf32>
      %88 = tpu.concatenate %84, %87 in 0 : vector<1x128xf32>, vector<1x128xf32> -> vector<2x128xf32>
      %c0_24 = arith.constant 0 : index
      %c0_25 = arith.constant 0 : index
      %89 = vector.load %arg5[%c0_24, %c0_25] : memref<2x128xf32, #tpu.memory_space<vmem>>, vector<2x128xf32>
      tpu.vector_store %arg5[%c0_24, %c0_25], %88 {strides = array<i32>} : memref<2x128xf32, #tpu.memory_space<vmem>>, vector<2x128xf32>,
    } else {
    }
    return
  }
  func.func @transform_0(%arg0: i32, %arg1: i32) -> (i32, i32) {
    %c0_i32 = arith.constant 0 : i32
    %c0_i32_0 = arith.constant 0 : i32
    return %arg1, %c0_i32 : i32, i32
  }
  func.func @transform_1(%arg0: i32, %arg1: i32) -> (i32, i32) {
    %c0_i32 = arith.constant 0 : i32
    %c0_i32_0 = arith.constant 0 : i32
    return %c0_i32, %arg0 : i32, i32
  }
  func.func @transform_2(%arg0: i32, %arg1: i32) -> (i32, i32) {
    %c0_i32 = arith.constant 0 : i32
    return %arg1, %arg0 : i32, i32
  }
  func.func @transform_3(%arg0: i32, %arg1: i32) -> (i32, i32) {
    %c0_i32 = arith.constant 0 : i32
    %c0_i32_0 = arith.constant 0 : i32
    return %c0_i32, %arg0 : i32, i32
  }
}

module attributes {stable_mosaic.version = 11 : i64} {
  func.func @_bn_kernel(%arg0: i32, %arg1: i32, %arg2: memref<128x128xf32, #tpu.memory_space<vmem>>, %arg3: memref<2x128xf32, #tpu.memory_space<vmem>>, %arg4: memref<1x128xf32, #tpu.memory_space<vmem>>, %arg5: memref<1x128xf32, #tpu.memory_space<vmem>>, %arg6: memref<128x128xf32, #tpu.memory_space<vmem>>) attributes {dimension_semantics = [#tpu.dimension_semantics<parallel>, #tpu.dimension_semantics<parallel>], iteration_bounds = array<i64: 1, 1>, scalar_prefetch = 0 : i64, scratch_operands = 0 : i64, tpu.core_type = #tpu.core_type<tc>, window_params = [{transform_indices = @transform_0, window_bounds = array<i64: 128, 128>}, {transform_indices = @transform_1, window_bounds = array<i64: 2, 128>}, {transform_indices = @transform_2, window_bounds = array<i64: 1, 128>}, {transform_indices = @transform_3, window_bounds = array<i64: 1, 128>}, {transform_indices = @transform_4, window_bounds = array<i64: 128, 128>}]} {
    %c0 = arith.constant 0 : index
    %c0_0 = arith.constant 0 : index
    %0 = vector.load %arg2[%c0, %c0_0] : memref<128x128xf32, #tpu.memory_space<vmem>>, vector<128x128xf32>
    %c0_1 = arith.constant 0 : index
    %c0_2 = arith.constant 0 : index
    %1 = vector.load %arg3[%c0_1, %c0_2] : memref<2x128xf32, #tpu.memory_space<vmem>>, vector<2x128xf32>
    %2 = vector.extract_strided_slice %1 {offsets = [0, 0], sizes = [1, 128], strides = [1, 1]} : vector<2x128xf32> to vector<1x128xf32>
    %cst = arith.constant 7.812500e-03 : f32
    %3 = vector.broadcast %cst : f32 to vector<1x128xf32>
    %4 = arith.mulf %2, %3 : vector<1x128xf32>
    %5 = vector.extract_strided_slice %1 {offsets = [1, 0], sizes = [1, 128], strides = [1, 1]} : vector<2x128xf32> to vector<1x128xf32>
    %cst_3 = arith.constant 7.812500e-03 : f32
    %6 = vector.broadcast %cst_3 : f32 to vector<1x128xf32>
    %7 = arith.mulf %5, %6 : vector<1x128xf32>
    %8 = arith.mulf %4, %4 : vector<1x128xf32>
    %9 = arith.subf %7, %8 : vector<1x128xf32>
    %cst_4 = arith.constant 0.000000e+00 : f32
    %10 = vector.broadcast %cst_4 : f32 to vector<1x128xf32>
    %11 = arith.maximumf %9, %10 : vector<1x128xf32>
    %cst_5 = arith.constant 9.99999974E-6 : f32
    %12 = vector.broadcast %cst_5 : f32 to vector<1x128xf32>
    %13 = arith.addf %11, %12 : vector<1x128xf32>
    %14 = math.rsqrt %13 : vector<1x128xf32>
    %15 = vector.broadcast %4 : vector<1x128xf32> to vector<128x128xf32>
    %16 = arith.subf %0, %15 : vector<128x128xf32>
    %c0_6 = arith.constant 0 : index
    %c0_7 = arith.constant 0 : index
    %17 = vector.load %arg4[%c0_6, %c0_7] : memref<1x128xf32, #tpu.memory_space<vmem>>, vector<1x128xf32>
    %18 = arith.mulf %14, %17 : vector<1x128xf32>
    %19 = vector.broadcast %18 : vector<1x128xf32> to vector<128x128xf32>
    %20 = arith.mulf %16, %19 : vector<128x128xf32>
    %c0_8 = arith.constant 0 : index
    %c0_9 = arith.constant 0 : index
    %21 = vector.load %arg5[%c0_8, %c0_9] : memref<1x128xf32, #tpu.memory_space<vmem>>, vector<1x128xf32>
    %22 = vector.broadcast %21 : vector<1x128xf32> to vector<128x128xf32>
    %23 = arith.addf %20, %22 : vector<128x128xf32>
    %cst_10 = arith.constant 0.000000e+00 : f32
    %24 = vector.broadcast %cst_10 : f32 to vector<128x128xf32>
    %25 = arith.maximumf %23, %24 : vector<128x128xf32>
    %c0_11 = arith.constant 0 : index
    %c0_12 = arith.constant 0 : index
    %26 = vector.load %arg6[%c0_11, %c0_12] : memref<128x128xf32, #tpu.memory_space<vmem>>, vector<128x128xf32>
    tpu.vector_store %arg6[%c0_11, %c0_12], %25 {strides = array<i32>} : memref<128x128xf32, #tpu.memory_space<vmem>>, vector<128x128xf32>,
    return
  }
  func.func @transform_0(%arg0: i32, %arg1: i32) -> (i32, i32) {
    %c0_i32 = arith.constant 0 : i32
    return %arg0, %arg1 : i32, i32
  }
  func.func @transform_1(%arg0: i32, %arg1: i32) -> (i32, i32) {
    %c0_i32 = arith.constant 0 : i32
    %c0_i32_0 = arith.constant 0 : i32
    return %c0_i32, %arg1 : i32, i32
  }
  func.func @transform_2(%arg0: i32, %arg1: i32) -> (i32, i32) {
    %c0_i32 = arith.constant 0 : i32
    %c0_i32_0 = arith.constant 0 : i32
    return %c0_i32, %arg1 : i32, i32
  }
  func.func @transform_3(%arg0: i32, %arg1: i32) -> (i32, i32) {
    %c0_i32 = arith.constant 0 : i32
    %c0_i32_0 = arith.constant 0 : i32
    return %c0_i32, %arg1 : i32, i32
  }
  func.func @transform_4(%arg0: i32, %arg1: i32) -> (i32, i32) {
    %c0_i32 = arith.constant 0 : i32
    return %arg0, %arg1 : i32, i32
  }
}

module attributes {stable_mosaic.version = 11 : i64} {
  func.func @_bn_kernel(%arg0: i32, %arg1: i32, %arg2: memref<128x128xf32, #tpu.memory_space<vmem>>, %arg3: memref<2x128xf32, #tpu.memory_space<vmem>>, %arg4: memref<1x128xf32, #tpu.memory_space<vmem>>, %arg5: memref<1x128xf32, #tpu.memory_space<vmem>>, %arg6: memref<128x128xf32, #tpu.memory_space<vmem>>, %arg7: memref<2x128xf32, #tpu.memory_space<vmem>>, %arg8: memref<1x128xf32, #tpu.memory_space<vmem>>, %arg9: memref<1x128xf32, #tpu.memory_space<vmem>>, %arg10: memref<128x128xf32, #tpu.memory_space<vmem>>) attributes {dimension_semantics = [#tpu.dimension_semantics<parallel>, #tpu.dimension_semantics<parallel>], iteration_bounds = array<i64: 1, 1>, scalar_prefetch = 0 : i64, scratch_operands = 0 : i64, tpu.core_type = #tpu.core_type<tc>, window_params = [{transform_indices = @transform_0, window_bounds = array<i64: 128, 128>}, {transform_indices = @transform_1, window_bounds = array<i64: 2, 128>}, {transform_indices = @transform_2, window_bounds = array<i64: 1, 128>}, {transform_indices = @transform_3, window_bounds = array<i64: 1, 128>}, {transform_indices = @transform_4, window_bounds = array<i64: 128, 128>}, {transform_indices = @transform_5, window_bounds = array<i64: 2, 128>}, {transform_indices = @transform_6, window_bounds = array<i64: 1, 128>}, {transform_indices = @transform_7, window_bounds = array<i64: 1, 128>}, {transform_indices = @transform_8, window_bounds = array<i64: 128, 128>}]} {
    %c0 = arith.constant 0 : index
    %c0_0 = arith.constant 0 : index
    %0 = vector.load %arg2[%c0, %c0_0] : memref<128x128xf32, #tpu.memory_space<vmem>>, vector<128x128xf32>
    %c0_1 = arith.constant 0 : index
    %c0_2 = arith.constant 0 : index
    %1 = vector.load %arg3[%c0_1, %c0_2] : memref<2x128xf32, #tpu.memory_space<vmem>>, vector<2x128xf32>
    %2 = vector.extract_strided_slice %1 {offsets = [0, 0], sizes = [1, 128], strides = [1, 1]} : vector<2x128xf32> to vector<1x128xf32>
    %cst = arith.constant 7.812500e-03 : f32
    %3 = vector.broadcast %cst : f32 to vector<1x128xf32>
    %4 = arith.mulf %2, %3 : vector<1x128xf32>
    %5 = vector.extract_strided_slice %1 {offsets = [1, 0], sizes = [1, 128], strides = [1, 1]} : vector<2x128xf32> to vector<1x128xf32>
    %cst_3 = arith.constant 7.812500e-03 : f32
    %6 = vector.broadcast %cst_3 : f32 to vector<1x128xf32>
    %7 = arith.mulf %5, %6 : vector<1x128xf32>
    %8 = arith.mulf %4, %4 : vector<1x128xf32>
    %9 = arith.subf %7, %8 : vector<1x128xf32>
    %cst_4 = arith.constant 0.000000e+00 : f32
    %10 = vector.broadcast %cst_4 : f32 to vector<1x128xf32>
    %11 = arith.maximumf %9, %10 : vector<1x128xf32>
    %cst_5 = arith.constant 9.99999974E-6 : f32
    %12 = vector.broadcast %cst_5 : f32 to vector<1x128xf32>
    %13 = arith.addf %11, %12 : vector<1x128xf32>
    %14 = math.rsqrt %13 : vector<1x128xf32>
    %15 = vector.broadcast %4 : vector<1x128xf32> to vector<128x128xf32>
    %16 = arith.subf %0, %15 : vector<128x128xf32>
    %c0_6 = arith.constant 0 : index
    %c0_7 = arith.constant 0 : index
    %17 = vector.load %arg4[%c0_6, %c0_7] : memref<1x128xf32, #tpu.memory_space<vmem>>, vector<1x128xf32>
    %18 = arith.mulf %14, %17 : vector<1x128xf32>
    %19 = vector.broadcast %18 : vector<1x128xf32> to vector<128x128xf32>
    %20 = arith.mulf %16, %19 : vector<128x128xf32>
    %c0_8 = arith.constant 0 : index
    %c0_9 = arith.constant 0 : index
    %21 = vector.load %arg5[%c0_8, %c0_9] : memref<1x128xf32, #tpu.memory_space<vmem>>, vector<1x128xf32>
    %22 = vector.broadcast %21 : vector<1x128xf32> to vector<128x128xf32>
    %23 = arith.addf %20, %22 : vector<128x128xf32>
    %c0_10 = arith.constant 0 : index
    %c0_11 = arith.constant 0 : index
    %24 = vector.load %arg6[%c0_10, %c0_11] : memref<128x128xf32, #tpu.memory_space<vmem>>, vector<128x128xf32>
    %c0_12 = arith.constant 0 : index
    %c0_13 = arith.constant 0 : index
    %25 = vector.load %arg7[%c0_12, %c0_13] : memref<2x128xf32, #tpu.memory_space<vmem>>, vector<2x128xf32>
    %26 = vector.extract_strided_slice %25 {offsets = [0, 0], sizes = [1, 128], strides = [1, 1]} : vector<2x128xf32> to vector<1x128xf32>
    %cst_14 = arith.constant 7.812500e-03 : f32
    %27 = vector.broadcast %cst_14 : f32 to vector<1x128xf32>
    %28 = arith.mulf %26, %27 : vector<1x128xf32>
    %29 = vector.extract_strided_slice %25 {offsets = [1, 0], sizes = [1, 128], strides = [1, 1]} : vector<2x128xf32> to vector<1x128xf32>
    %cst_15 = arith.constant 7.812500e-03 : f32
    %30 = vector.broadcast %cst_15 : f32 to vector<1x128xf32>
    %31 = arith.mulf %29, %30 : vector<1x128xf32>
    %32 = arith.mulf %28, %28 : vector<1x128xf32>
    %33 = arith.subf %31, %32 : vector<1x128xf32>
    %cst_16 = arith.constant 0.000000e+00 : f32
    %34 = vector.broadcast %cst_16 : f32 to vector<1x128xf32>
    %35 = arith.maximumf %33, %34 : vector<1x128xf32>
    %cst_17 = arith.constant 9.99999974E-6 : f32
    %36 = vector.broadcast %cst_17 : f32 to vector<1x128xf32>
    %37 = arith.addf %35, %36 : vector<1x128xf32>
    %38 = math.rsqrt %37 : vector<1x128xf32>
    %39 = vector.broadcast %28 : vector<1x128xf32> to vector<128x128xf32>
    %40 = arith.subf %24, %39 : vector<128x128xf32>
    %c0_18 = arith.constant 0 : index
    %c0_19 = arith.constant 0 : index
    %41 = vector.load %arg8[%c0_18, %c0_19] : memref<1x128xf32, #tpu.memory_space<vmem>>, vector<1x128xf32>
    %42 = arith.mulf %38, %41 : vector<1x128xf32>
    %43 = vector.broadcast %42 : vector<1x128xf32> to vector<128x128xf32>
    %44 = arith.mulf %40, %43 : vector<128x128xf32>
    %c0_20 = arith.constant 0 : index
    %c0_21 = arith.constant 0 : index
    %45 = vector.load %arg9[%c0_20, %c0_21] : memref<1x128xf32, #tpu.memory_space<vmem>>, vector<1x128xf32>
    %46 = vector.broadcast %45 : vector<1x128xf32> to vector<128x128xf32>
    %47 = arith.addf %44, %46 : vector<128x128xf32>
    %48 = arith.addf %23, %47 : vector<128x128xf32>
    %cst_22 = arith.constant 0.000000e+00 : f32
    %49 = vector.broadcast %cst_22 : f32 to vector<128x128xf32>
    %50 = arith.maximumf %48, %49 : vector<128x128xf32>
    %c0_23 = arith.constant 0 : index
    %c0_24 = arith.constant 0 : index
    %51 = vector.load %arg10[%c0_23, %c0_24] : memref<128x128xf32, #tpu.memory_space<vmem>>, vector<128x128xf32>
    tpu.vector_store %arg10[%c0_23, %c0_24], %50 {strides = array<i32>} : memref<128x128xf32, #tpu.memory_space<vmem>>, vector<128x128xf32>,
    return
  }
  func.func @transform_0(%arg0: i32, %arg1: i32) -> (i32, i32) {
    %c0_i32 = arith.constant 0 : i32
    return %arg0, %arg1 : i32, i32
  }
  func.func @transform_1(%arg0: i32, %arg1: i32) -> (i32, i32) {
    %c0_i32 = arith.constant 0 : i32
    %c0_i32_0 = arith.constant 0 : i32
    return %c0_i32, %arg1 : i32, i32
  }
  func.func @transform_2(%arg0: i32, %arg1: i32) -> (i32, i32) {
    %c0_i32 = arith.constant 0 : i32
    %c0_i32_0 = arith.constant 0 : i32
    return %c0_i32, %arg1 : i32, i32
  }
  func.func @transform_3(%arg0: i32, %arg1: i32) -> (i32, i32) {
    %c0_i32 = arith.constant 0 : i32
    %c0_i32_0 = arith.constant 0 : i32
    return %c0_i32, %arg1 : i32, i32
  }
  func.func @transform_4(%arg0: i32, %arg1: i32) -> (i32, i32) {
    %c0_i32 = arith.constant 0 : i32
    return %arg0, %arg1 : i32, i32
  }
  func.func @transform_5(%arg0: i32, %arg1: i32) -> (i32, i32) {
    %c0_i32 = arith.constant 0 : i32
    %c0_i32_0 = arith.constant 0 : i32
    return %c0_i32, %arg1 : i32, i32
  }
  func.func @transform_6(%arg0: i32, %arg1: i32) -> (i32, i32) {
    %c0_i32 = arith.constant 0 : i32
    %c0_i32_0 = arith.constant 0 : i32
    return %c0_i32, %arg1 : i32, i32
  }
  func.func @transform_7(%arg0: i32, %arg1: i32) -> (i32, i32) {
    %c0_i32 = arith.constant 0 : i32
    %c0_i32_0 = arith.constant 0 : i32
    return %c0_i32, %arg1 : i32, i32
  }
  func.func @transform_8(%arg0: i32, %arg1: i32) -> (i32, i32) {
    %c0_i32 = arith.constant 0 : i32
    return %arg0, %arg1 : i32, i32
  }
}

</mosaic_0001>

<bundles_post_ra>
// kernel: residual_block_forward.6
= control target key start
LH: loop header
LB: loop body
LE: loop exit
PB: predicated region body
PF: predicated region fallthrough
CT: control target
= control target key end

     0   :  { %v43_v6 = vlaneseq  ;;  %s302_s1 = inlined_call_operand.vmem [shape: f32[2,128], index: 1, kind: input, shape index: {}]   ;;  %s303_s0 = inlined_call_operand.vmem [shape: f32[128,128], index: 0, kind: input, shape index: {}]   ;;  %s304_s2 = inlined_call_operand.vmem [shape: f32[1,128], index: 2, kind: input, shape index: {}]   ;;  %s305_s3 = inlined_call_operand.vmem [shape: f32[1,128], index: 3, kind: input, shape index: {}]   ;;  %s306_s4 = inlined_call_operand.vmem [shape: f32[128,128], index: 4, kind: output, shape index: {}]  }
   0x1   :  { %v33_v0 = vld [vmem:[%s302_s1] sm:$0x3]  ;;  %v18_v13 = vld [vmem:[%s303_s0 + $0x8] sm:$0xff]  ;;  %v19_v14 = vld [vmem:[%s303_s0 + $0x10] sm:$0xff] }
   0x2   :  { %v34_v1 = vmul.f32 0.0078125, %v33_v0  ;;  %v44_v8 = vshrl.u32 %v43_v6, 7  ;;  %v17_v10 = vld [vmem:[%s303_s0] sm:$0xff]  ;;  %v20_v15 = vld [vmem:[%s303_s0 + $0x18] sm:$0xff]  ;;  %v22_v17 = vld [vmem:[%s303_s0 + $0x28] sm:$0xff] }
   0x3   :  { %v150_v12 = vld [vmem:[%s304_s2] ss:$0 sm:$0xff]  ;;  %v23_v18 = vld [vmem:[%s303_s0 + $0x30] sm:$0xff]  ;;  %v24_v20 = vld [vmem:[%s303_s0 + $0x38] sm:$0xff] }
   0x4   :  { %v35_v2 = vmul.f32 %v34_v1, %v34_v1  ;;  %v45_v9 = vsub.s32 0, %v44_v8  ;;  %v21_v16 = vld [vmem:[%s303_s0 + $0x20] sm:$0xff]  ;;  %v73_v19 = vsub.s32 1, %v44_v8  ;;  %v26_v22 = vld [vmem:[%s303_s0 + $0x48] sm:$0xff]  ;;  %v27_v26 = vld [vmem:[%s303_s0 + $0x50] sm:$0xff] }
   0x5   :  { %v25_v21 = vld [vmem:[%s303_s0 + $0x40] sm:$0xff]  ;;  %v28_v27 = vld [vmem:[%s303_s0 + $0x58] sm:$0xff]  ;;  %v30_v33 = vld [vmem:[%s303_s0 + $0x68] sm:$0xff] }
   0x6   :  { %v37_v3 = vrot.slane %v35_v2, 7  ;;  %v185_v11 = vrot.slane %v34_v1, %v45_v9  ;;  %v29_v28 = vld [vmem:[%s303_s0 + $0x60] sm:$0xff]  ;;  %v31_v34 = vld [vmem:[%s303_s0 + $0x70] sm:$0xff]  ;;  %v32_v35 = vld [vmem:[%s303_s0 + $0x78] sm:$0xff] }
   0x7   :  { %v151_v44 = vld [vmem:[%s305_s3] ss:$0 sm:$0xff] }
   0x8   :  { %v39_v4 = vsub.f32 %v34_v1, %v37_v3  ;;  %v47_v24 = vsub.f32 %v17_v10, %v185_v11  ;;  %v48_v25 = vsub.f32 %v18_v13, %v185_v11  ;;  %v49_v30 = vsub.f32 %v19_v14, %v185_v11 }
   0x9   :  { %v50_v31 = vsub.f32 %v20_v15, %v185_v11  ;;  %v51_v32 = vsub.f32 %v21_v16, %v185_v11  ;;  %v52_v36 = vsub.f32 %v22_v17, %v185_v11  ;;  %v53_v37 = vsub.f32 %v23_v18, %v185_v11 }
   0xa   :  { %v40_v5 = vmax.f32 %v39_v4, 0.0  ;;  %v54_v38 = vsub.f32 %v24_v20, %v185_v11  ;;  %v55_v39 = vsub.f32 %v25_v21, %v185_v11  ;;  %v56_v41 = vsub.f32 %v26_v22, %v185_v11 }
   0xb   :  { %v57_v42 = vsub.f32 %v27_v26, %v185_v11  ;;  %v58_v43 = vsub.f32 %v28_v27, %v185_v11  ;;  %v59_v45 = vsub.f32 %v29_v28, %v185_v11  ;;  %v60_v46 = vsub.f32 %v30_v33, %v185_v11 }
   0xc   :  { %v41_v7 = vadd.f32 1e-05, %v40_v5  ;;  %v61_v47 = vsub.f32 %v31_v34, %v185_v11  ;;  %v62_v48 = vsub.f32 %v32_v35, %v185_v11 }
   0xe   :  { %152 = vrsqrt.f32 %v41_v7 }
  0x1b   :  { %v153_v23 = vpop.eup %152 }
  0x1c   :  { %v70_v29 = vmul.f32 %v153_v23, %v150_v12 }
  0x1e   :  { %v74_v40 = vrot.slane %v70_v29, %v73_v19 }
  0x20   :  { %v75_v49 = vmul.f32 %v74_v40, %v47_v24  ;;  %v76_v50 = vmul.f32 %v74_v40, %v48_v25  ;;  %v77_v51 = vmul.f32 %v74_v40, %v49_v30  ;;  %v78_v52 = vmul.f32 %v74_v40, %v50_v31 }
  0x21   :  { %v79_v53 = vmul.f32 %v74_v40, %v51_v32  ;;  %v80_v54 = vmul.f32 %v74_v40, %v52_v36  ;;  %v81_v55 = vmul.f32 %v74_v40, %v53_v37  ;;  %v82_v56 = vmul.f32 %v74_v40, %v54_v38 }
  0x22   :  { %v98_v57 = vadd.f32 %v151_v44, %v75_v49  ;;  %v99_v58 = vadd.f32 %v151_v44, %v76_v50  ;;  %v100_v59 = vadd.f32 %v151_v44, %v77_v51  ;;  %v101_v60 = vadd.f32 %v151_v44, %v78_v52 }
  0x23   :  { %v102_v61 = vadd.f32 %v151_v44, %v79_v53  ;;  %v103_v62 = vadd.f32 %v151_v44, %v80_v54  ;;  %v104_v63 = vadd.f32 %v151_v44, %v81_v55  ;;  %v105_v0 = vadd.f32 %v151_v44, %v82_v56 }
  0x24   :  { %v114_v1 = vmax.f32 %v98_v57, 0.0  ;;  %v115_v2 = vmax.f32 %v99_v58, 0.0  ;;  %v116_v3 = vmax.f32 %v100_v59, 0.0  ;;  %v117_v4 = vmax.f32 %v101_v60, 0.0 }
  0x25   :  { %v118_v5 = vmax.f32 %v102_v61, 0.0  ;;  %v119_v6 = vmax.f32 %v103_v62, 0.0  ;;  %v120_v7 = vmax.f32 %v104_v63, 0.0  ;;  %v121_v8 = vmax.f32 %v105_v0, 0.0 }
  0x26   :  { %130 = vst [vmem:[%s306_s4] sm:$0xff] %v114_v1  ;;  %131 = vst [vmem:[%s306_s4 + $0x8] sm:$0xff] %v115_v2  ;;  %v83_v9 = vmul.f32 %v74_v40, %v55_v39  ;;  %v84_v10 = vmul.f32 %v74_v40, %v56_v41  ;;  %v85_v11 = vmul.f32 %v74_v40, %v57_v42 }
  0x27   :  { %132 = vst [vmem:[%s306_s4 + $0x10] sm:$0xff] %v116_v3  ;;  %133 = vst [vmem:[%s306_s4 + $0x18] sm:$0xff] %v117_v4  ;;  %v86_v12 = vmul.f32 %v74_v40, %v58_v43  ;;  %v87_v13 = vmul.f32 %v74_v40, %v59_v45  ;;  %v88_v14 = vmul.f32 %v74_v40, %v60_v46 }
  0x28   :  { %134 = vst [vmem:[%s306_s4 + $0x20] sm:$0xff] %v118_v5  ;;  %135 = vst [vmem:[%s306_s4 + $0x28] sm:$0xff] %v119_v6  ;;  %v89_v15 = vmul.f32 %v74_v40, %v61_v47  ;;  %v90_v16 = vmul.f32 %v74_v40, %v62_v48  ;;  %v106_v17 = vadd.f32 %v151_v44, %v83_v9 }
  0x29   :  { %136 = vst [vmem:[%s306_s4 + $0x30] sm:$0xff] %v120_v7  ;;  %137 = vst [vmem:[%s306_s4 + $0x38] sm:$0xff] %v121_v8  ;;  %v107_v18 = vadd.f32 %v151_v44, %v84_v10  ;;  %v108_v19 = vadd.f32 %v151_v44, %v85_v11  ;;  %v109_v20 = vadd.f32 %v151_v44, %v86_v12 }
  0x2a   :  { %v110_v21 = vadd.f32 %v151_v44, %v87_v13  ;;  %v111_v22 = vadd.f32 %v151_v44, %v88_v14  ;;  %v112_v23 = vadd.f32 %v151_v44, %v89_v15  ;;  %v113_v24 = vadd.f32 %v151_v44, %v90_v16 }
  0x2b   :  { %v122_v25 = vmax.f32 %v106_v17, 0.0  ;;  %v123_v26 = vmax.f32 %v107_v18, 0.0  ;;  %v124_v27 = vmax.f32 %v108_v19, 0.0  ;;  %v125_v28 = vmax.f32 %v109_v20, 0.0 }
  0x2c   :  { %v126_v29 = vmax.f32 %v110_v21, 0.0  ;;  %v127_v30 = vmax.f32 %v111_v22, 0.0  ;;  %v128_v31 = vmax.f32 %v112_v23, 0.0  ;;  %v129_v32 = vmax.f32 %v113_v24, 0.0 }
  0x2d   :  { %138 = vst [vmem:[%s306_s4 + $0x40] sm:$0xff] %v122_v25  ;;  %139 = vst [vmem:[%s306_s4 + $0x48] sm:$0xff] %v123_v26 }
  0x2e   :  { %140 = vst [vmem:[%s306_s4 + $0x50] sm:$0xff] %v124_v27  ;;  %141 = vst [vmem:[%s306_s4 + $0x58] sm:$0xff] %v125_v28 }
  0x2f   :  { %142 = vst [vmem:[%s306_s4 + $0x60] sm:$0xff] %v126_v29  ;;  %143 = vst [vmem:[%s306_s4 + $0x68] sm:$0xff] %v127_v30 }
  0x30   :  { %144 = vst [vmem:[%s306_s4 + $0x70] sm:$0xff] %v128_v31  ;;  %145 = vst [vmem:[%s306_s4 + $0x78] sm:$0xff] %v129_v32 }

// kernel: residual_block_forward.5
= control target key start
LH: loop header
LB: loop body
LE: loop exit
PB: predicated region body
PF: predicated region fallthrough
CT: control target
= control target key end

     0   :  { %vm332_vm0 = vcmask 1040384   ;;  %s558_s1 = inlined_call_operand.vmem [shape: bf16[128,128], index: 1, kind: input, shape index: {}]   ;;  %s559_s0 = inlined_call_operand.vmem [shape: bf16[128,128], index: 0, kind: input, shape index: {}]   ;;  %s560_s2 = inlined_call_operand.vmem [shape: f32[128,128], index: 2, kind: output, shape index: {0}]   ;;  %s561_s3 = inlined_call_operand.vmem [shape: f32[2,128], index: 3, kind: output, shape index: {1}]  }
   0x1   :  { %v423_v0 = vld [vmem:[%s558_s1 + $0x38] sm:$0xff]   ;;  %v424_v1 = vld [vmem:[%s558_s1 + $0x30] sm:$0xff]   ;;  %v425_v2 = vld [vmem:[%s558_s1 + $0x28] sm:$0xff]  }
   0x2   :  { %375 = vmatprep.subr.bf16.mxu0 %v423_v0  ;;  %407 = vmatprep.subr.bf16.mxu1 %v423_v0  ;;  %v426_v3 = vld [vmem:[%s558_s1 + $0x20] sm:$0xff]   ;;  %v427_v5 = vld [vmem:[%s558_s1 + $0x18] sm:$0xff]   ;;  %v428_v7 = vld [vmem:[%s558_s1 + $0x10] sm:$0xff]  }
   0x3   :  { %376 = vmatpush3.bf16.msra.mxu0 %v423_v0  ;;  %415 = vmatpush3.bf16.msra.mxu1 %v423_v0  ;;  %v431_v4 = vld [vmem:[%s559_s0] sm:$0xff]   ;;  %v429_v8 = vld [vmem:[%s558_s1 + $0x8] sm:$0xff]   ;;  %v433_v12 = vld [vmem:[%s559_s0 + $0x10] sm:$0xff]  }
   0x4   :  { %377 = vmatprep.subr.bf16.mxu0 %v424_v1  ;;  %408 = vmatprep.subr.bf16.mxu1 %v424_v1  ;;  %v435_v6 = vld [vmem:[%s559_s0 + $0x20] sm:$0xff]   ;;  %v432_v10 = vld [vmem:[%s559_s0 + $0x8] sm:$0xff]   ;;  %v437_v13 = vld [vmem:[%s559_s0 + $0x30] sm:$0xff]  }
   0x5   :  { %391 = vmatprep.mubr.bf16.mxu0 %v431_v4  ;;  %399 = vmatprep.mubr.bf16.mxu1 %v435_v6  ;;  %v430_v9 = vld [vmem:[%s558_s1] sm:$0xff]   ;;  %v436_v11 = vld [vmem:[%s559_s0 + $0x28] sm:$0xff]   ;;  %v434_v14 = vld [vmem:[%s559_s0 + $0x18] sm:$0xff]  }
   0x6   :  { %v438_v15 = vld [vmem:[%s559_s0 + $0x38] sm:$0xff]  }
   0x7   :  { %378 = vmatpush3.bf16.msra.mxu0 %v424_v1  ;;  %416 = vmatpush3.bf16.msra.mxu1 %v424_v1 }
   0x8   :  { %379 = vmatprep.subr.bf16.mxu0 %v425_v2  ;;  %409 = vmatprep.subr.bf16.mxu1 %v425_v2 }
   0xb   :  { %380 = vmatpush3.bf16.msra.mxu0 %v425_v2  ;;  %417 = vmatpush3.bf16.msra.mxu1 %v425_v2 }
   0xc   :  { %381 = vmatprep.subr.bf16.mxu0 %v426_v3  ;;  %410 = vmatprep.subr.bf16.mxu1 %v426_v3 }
   0xf   :  { %382 = vmatpush3.bf16.msra.mxu0 %v426_v3  ;;  %418 = vmatpush3.bf16.msra.mxu1 %v426_v3 }
  0x10   :  { %383 = vmatprep.subr.bf16.mxu0 %v427_v5  ;;  %411 = vmatprep.subr.bf16.mxu1 %v427_v5 }
  0x13   :  { %384 = vmatpush3.bf16.msra.mxu0 %v427_v5  ;;  %419 = vmatpush3.bf16.msra.mxu1 %v427_v5 }
  0x14   :  { %385 = vmatprep.subr.bf16.mxu0 %v428_v7  ;;  %412 = vmatprep.subr.bf16.mxu1 %v428_v7 }
  0x17   :  { %386 = vmatpush3.bf16.msra.mxu0 %v428_v7  ;;  %420 = vmatpush3.bf16.msra.mxu1 %v428_v7 }
  0x18   :  { %387 = vmatprep.subr.bf16.mxu0 %v429_v8  ;;  %413 = vmatprep.subr.bf16.mxu1 %v429_v8 }
  0x1b   :  { %388 = vmatpush3.bf16.msra.mxu0 %v429_v8  ;;  %421 = vmatpush3.bf16.msra.mxu1 %v429_v8 }
  0x1c   :  { %389 = vmatprep.subr.bf16.mxu0 %v430_v9  ;;  %414 = vmatprep.subr.bf16.mxu1 %v430_v9 }
  0x1f   :  { %390 = vmatpush3.bf16.msra.mxu0 %v430_v9  ;;  %422 = vmatpush3.bf16.msra.mxu1 %v430_v9 }
  0x22   :  { %392 = vmatmul.mubr.bf16.vlgmr.msra.gmra.mxu0 %v432_v10  ;;  %400 = vmatmul.mubr.bf16.vlgmr.msra.gmra.mxu1 %v436_v11 }
  0x23   :  { %395 = vmatprep.mubr.bf16.mxu0 %v433_v12  ;;  %403 = vmatprep.mubr.bf16.mxu1 %v437_v13 }
  0x2a   :  { %396 = vmatmul.mubr.bf16.gmra.mxu0 %v434_v14  ;;  %404 = vmatmul.mubr.bf16.gmra.mxu1 %v438_v15 }
  0xe2   :  { %v393_v16 = vpop.f32.mrf.mxu0  ;;  %v401_v17 = vpop.f32.mrf.mxu1 }
  0xe3   :  { %247 = vst [vmem:[%s560_s2 + $0x10] sm:$0xff] %v393_v16  ;;  %255 = vst [vmem:[%s560_s2 + $0x50] sm:$0xff] %v401_v17  ;;  %v268_v29 = vmul.f32 %v393_v16, %v393_v16  ;;  %v292_v59 = vmul.f32 %v401_v17, %v401_v17 }
  0xe4   :  { %v182_v18 = vpop.f32.mrf.mxu0  ;;  %v214_v19 = vpop.f32.mrf.mxu1 }
  0xe5   :  { %245 = vst [vmem:[%s560_s2] sm:$0xff] %v182_v18  ;;  %253 = vst [vmem:[%s560_s2 + $0x40] sm:$0xff] %v214_v19  ;;  %v262_v24 = vmul.f32 %v182_v18, %v182_v18  ;;  %v286_v53 = vmul.f32 %v214_v19, %v214_v19 }
  0xe6   :  { %v394_v20 = vpop.f32.mrf.mxu0  ;;  %v402_v21 = vpop.f32.mrf.mxu1 }
  0xe7   :  { %248 = vst [vmem:[%s560_s2 + $0x18] sm:$0xff] %v394_v20  ;;  %256 = vst [vmem:[%s560_s2 + $0x58] sm:$0xff] %v402_v21  ;;  %v271_v34 = vmul.f32 %v394_v20, %v394_v20  ;;  %v295_v62 = vmul.f32 %v402_v21, %v402_v21 }
  0xe8   :  { %v185_v22 = vpop.f32.mrf.mxu0  ;;  %v217_v23 = vpop.f32.mrf.mxu1 }
  0xe9   :  { %246 = vst [vmem:[%s560_s2 + $0x8] sm:$0xff] %v185_v22  ;;  %v264_v25 = vadd.f32 %v185_v22, %v182_v18  ;;  %v265_v26 = vmul.f32 %v185_v22, %v185_v22  ;;  %254 = vst [vmem:[%s560_s2 + $0x48] sm:$0xff] %v217_v23  ;;  %v289_v58 = vmul.f32 %v217_v23, %v217_v23 }
  0xea   :  { %v397_v27 = vpop.f32.mrf.mxu0  ;;  %v405_v28 = vpop.f32.mrf.mxu1 }
  0xeb   :  { %v266_v30 = vadd.f32 %v265_v26, %v262_v24  ;;  %v267_v31 = vadd.f32 %v393_v16, %v264_v25  ;;  %251 = vst [vmem:[%s560_s2 + $0x30] sm:$0xff] %v397_v27  ;;  %259 = vst [vmem:[%s560_s2 + $0x70] sm:$0xff] %v405_v28  ;;  %v280_v47 = vmul.f32 %v397_v27, %v397_v27 }
  0xec   :  { %v198_v32 = vpop.f32.mrf.mxu0  ;;  %v230_v33 = vpop.f32.mrf.mxu1  ;;  %v304_v7 = vmul.f32 %v405_v28, %v405_v28 }
  0xed   :  { %v269_v35 = vadd.f32 %v268_v29, %v266_v30  ;;  %249 = vst [vmem:[%s560_s2 + $0x20] sm:$0xff] %v198_v32  ;;  %v270_v36 = vadd.f32 %v394_v20, %v267_v31  ;;  %257 = vst [vmem:[%s560_s2 + $0x60] sm:$0xff] %v230_v33  ;;  %v274_v41 = vmul.f32 %v198_v32, %v198_v32 }
  0xee   :  { %v398_v37 = vpop.f32.mrf.mxu0  ;;  %v406_v38 = vpop.f32.mrf.mxu1  ;;  %v298_v3 = vmul.f32 %v230_v33, %v230_v33 }
  0xef   :  { %v272_v39 = vadd.f32 %v271_v34, %v269_v35  ;;  %v273_v40 = vadd.f32 %v270_v36, %v198_v32  ;;  %252 = vst [vmem:[%s560_s2 + $0x38] sm:$0xff] %v398_v37  ;;  %260 = vst [vmem:[%s560_s2 + $0x78] sm:$0xff] %v406_v38  ;;  %v283_v50 = vmul.f32 %v398_v37, %v398_v37 }
  0xf0   :  { %v201_v42 = vpop.f32.mrf.mxu0  ;;  %v233_v43 = vpop.f32.mrf.mxu1  ;;  %v307_v10 = vmul.f32 %v406_v38, %v406_v38 }
  0xf1   :  { %v275_v44 = vadd.f32 %v274_v41, %v272_v39  ;;  %250 = vst [vmem:[%s560_s2 + $0x28] sm:$0xff] %v201_v42  ;;  %v276_v45 = vadd.f32 %v273_v40, %v201_v42  ;;  %v277_v46 = vmul.f32 %v201_v42, %v201_v42  ;;  %258 = vst [vmem:[%s560_s2 + $0x68] sm:$0xff] %v233_v43 }
  0xf2   :  { %v301_v6 = vmul.f32 %v233_v43, %v233_v43 }
  0xf3   :  { %v278_v48 = vadd.f32 %v277_v46, %v275_v44  ;;  %v279_v49 = vadd.f32 %v397_v27, %v276_v45 }
  0xf5   :  { %v281_v51 = vadd.f32 %v280_v47, %v278_v48  ;;  %v282_v52 = vadd.f32 %v398_v37, %v279_v49 }
  0xf7   :  { %v284_v54 = vadd.f32 %v283_v50, %v281_v51  ;;  %v285_v55 = vadd.f32 %v282_v52, %v214_v19 }
  0xf9   :  { %v287_v56 = vadd.f32 %v286_v53, %v284_v54  ;;  %v288_v57 = vadd.f32 %v285_v55, %v217_v23 }
  0xfb   :  { %v290_v60 = vadd.f32 %v289_v58, %v287_v56  ;;  %v291_v61 = vadd.f32 %v401_v17, %v288_v57 }
  0xfd   :  { %v293_v63 = vadd.f32 %v292_v59, %v290_v60  ;;  %v294_v0 = vadd.f32 %v402_v21, %v291_v61 }
  0xff   :  { %v296_v1 = vadd.f32 %v295_v62, %v293_v63  ;;  %v297_v2 = vadd.f32 %v294_v0, %v230_v33 }
 0x101   :  { %v299_v4 = vadd.f32 %v298_v3, %v296_v1  ;;  %v300_v5 = vadd.f32 %v297_v2, %v233_v43 }
 0x103   :  { %v302_v8 = vadd.f32 %v301_v6, %v299_v4  ;;  %v303_v9 = vadd.f32 %v405_v28, %v300_v5 }
 0x105   :  { %v305_v11 = vadd.f32 %v304_v7, %v302_v8  ;;  %v306_v12 = vadd.f32 %v406_v38, %v303_v9 }
 0x107   :  { %v308_v13 = vadd.f32 %v307_v10, %v305_v11  ;;  %v319_v14 = vrot.slane %v306_v12, 4 }
 0x109   :  { %v320_v15 = vadd.f32 %v319_v14, %v306_v12  ;;  %v326_v16 = vrot.slane %v308_v13, 4 }
 0x10b   :  { %v321_v17 = vrot.slane %v320_v15, 2  ;;  %v327_v18 = vadd.f32 %v326_v16, %v308_v13 }
 0x10d   :  { %v322_v19 = vadd.f32 %v321_v17, %v320_v15  ;;  %v328_v20 = vrot.slane %v327_v18, 2 }
 0x10f   :  { %v323_v21 = vrot.slane %v322_v19, 1  ;;  %v329_v22 = vadd.f32 %v328_v20, %v327_v18 }
 0x111   :  { %v330_v23 = vrot.slane %v329_v22, 1  ;;  %v324_v24 = vadd.f32 %v323_v21, %v322_v19 }
 0x113   :  { %v331_v25 = vadd.f32 %v330_v23, %v329_v22 }
 0x115   :  { %v333_v26 = vsel %vm332_vm0, %v324_v24, %v331_v25 }
 0x116   :  { %334 = vst [vmem:[%s561_s3] sm:$0x3] %v333_v26 }

// kernel: residual_block_forward.9
= control target key start
LH: loop header
LB: loop body
LE: loop exit
PB: predicated region body
PF: predicated region fallthrough
CT: control target
= control target key end

     0   :  { %v55_v7 = vlaneseq  ;;  %s767_s1 = inlined_call_operand.vmem [shape: f32[2,128], index: 1, kind: input, shape index: {}]   ;;  %s768_s5 = inlined_call_operand.vmem [shape: f32[2,128], index: 5, kind: input, shape index: {}]   ;;  %s769_s0 = inlined_call_operand.vmem [shape: f32[128,128], index: 0, kind: input, shape index: {}]   ;;  %s770_s4 = inlined_call_operand.vmem [shape: f32[128,128], index: 4, kind: input, shape index: {}]   ;;  %s771_s2 = inlined_call_operand.vmem [shape: f32[1,128], index: 2, kind: input, shape index: {}]   ;;  %s772_s6 = inlined_call_operand.vmem [shape: f32[1,128], index: 6, kind: input, shape index: {}]   ;;  %s773_s3 = inlined_call_operand.vmem [shape: f32[1,128], index: 3, kind: input, shape index: {}]   ;;  %s774_s7 = inlined_call_operand.vmem [shape: f32[1,128], index: 7, kind: input, shape index: {}]   ;;  %s775_s8 = inlined_call_operand.vmem [shape: f32[128,128], index: 8, kind: output, shape index: {}]  }
   0x1   :  { %v45_v0 = vld [vmem:[%s767_s1] sm:$0x3]  ;;  %v354_v21 = vld [vmem:[%s769_s0 + $0x8] sm:$0xff]  ;;  %v364_v23 = vld [vmem:[%s769_s0 + $0x10] sm:$0xff] }
   0x2   :  { %v46_v1 = vmul.f32 0.0078125, %v45_v0  ;;  %v142_v2 = vld [vmem:[%s768_s5] sm:$0x3]  ;;  %v334_v12 = vshrl.u32 %v55_v7, 7  ;;  %v359_v22 = vld [vmem:[%s770_s4 + $0x8] sm:$0xff]  ;;  %v369_v24 = vld [vmem:[%s770_s4 + $0x10] sm:$0xff] }
   0x3   :  { %v143_v4 = vmul.f32 0.0078125, %v142_v2  ;;  %v340_v17 = vld [vmem:[%s769_s0] sm:$0xff]  ;;  %v374_v25 = vld [vmem:[%s769_s0 + $0x18] sm:$0xff]  ;;  %v394_v29 = vld [vmem:[%s769_s0 + $0x28] sm:$0xff] }
   0x4   :  { %v47_v3 = vmul.f32 %v46_v1, %v46_v1  ;;  %v57_v16 = vsub.s32 0, %v334_v12  ;;  %v345_v18 = vld [vmem:[%s770_s4] sm:$0xff]  ;;  %v379_v26 = vld [vmem:[%s770_s4 + $0x18] sm:$0xff]  ;;  %v399_v30 = vld [vmem:[%s770_s4 + $0x28] sm:$0xff]  ;;  %v85_v35 = vsub.s32 1, %v334_v12 }
   0x5   :  { %v144_v6 = vmul.f32 %v143_v4, %v143_v4  ;;  %v384_v27 = vld [vmem:[%s769_s0 + $0x20] sm:$0xff]  ;;  %v404_v31 = vld [vmem:[%s769_s0 + $0x30] sm:$0xff]  ;;  %v424_v38 = vld [vmem:[%s769_s0 + $0x38] sm:$0xff] }
   0x6   :  { %v49_v5 = vrot.slane %v47_v3, 7  ;;  %v347_v19 = vrot.slane %v46_v1, %v57_v16  ;;  %v349_v20 = vrot.slane %v143_v4, %v57_v16  ;;  %v389_v28 = vld [vmem:[%s770_s4 + $0x20] sm:$0xff]  ;;  %v409_v32 = vld [vmem:[%s770_s4 + $0x30] sm:$0xff]  ;;  %v429_v39 = vld [vmem:[%s770_s4 + $0x38] sm:$0xff] }
   0x7   :  { %v146_v9 = vrot.slane %v144_v6, 7  ;;  %v275_v34 = vld [vmem:[%s771_s2] ss:$0 sm:$0xff]  ;;  %v452_v46 = vld [vmem:[%s769_s0 + $0x48] sm:$0xff]  ;;  %v473_v53 = vld [vmem:[%s769_s0 + $0x50] sm:$0xff] }
   0x8   :  { %v51_v8 = vsub.f32 %v46_v1, %v49_v5  ;;  %v59_v33 = vsub.f32 %v340_v17, %v347_v19  ;;  %v156_v36 = vsub.f32 %v345_v18, %v349_v20  ;;  %v60_v37 = vsub.f32 %v354_v21, %v347_v19  ;;  %v434_v40 = vld [vmem:[%s769_s0 + $0x40] sm:$0xff]  ;;  %v457_v47 = vld [vmem:[%s770_s4 + $0x48] sm:$0xff]  ;;  %v478_v54 = vld [vmem:[%s770_s4 + $0x50] sm:$0xff] }
   0x9   :  { %v148_v11 = vsub.f32 %v143_v4, %v146_v9  ;;  %v157_v41 = vsub.f32 %v359_v22, %v349_v20  ;;  %v61_v42 = vsub.f32 %v364_v23, %v347_v19  ;;  %v158_v43 = vsub.f32 %v369_v24, %v349_v20  ;;  %v447_v45 = vld [vmem:[%s770_s4 + $0x40] sm:$0xff]  ;;  %v483_v55 = vld [vmem:[%s769_s0 + $0x58] sm:$0xff]  ;;  %v519_v4 = vld [vmem:[%s769_s0 + $0x68] sm:$0xff] }
   0xa   :  { %v52_v10 = vmax.f32 %v51_v8, 0.0  ;;  %v62_v44 = vsub.f32 %v374_v25, %v347_v19  ;;  %v277_v48 = vld [vmem:[%s772_s6] ss:$0 sm:$0xff]  ;;  %v159_v49 = vsub.f32 %v379_v26, %v349_v20  ;;  %v63_v50 = vsub.f32 %v384_v27, %v347_v19  ;;  %v496_v60 = vld [vmem:[%s770_s4 + $0x58] sm:$0xff]  ;;  %v524_v5 = vld [vmem:[%s770_s4 + $0x68] sm:$0xff] }
   0xb   :  { %v149_v14 = vmax.f32 %v148_v11, 0.0  ;;  %v160_v51 = vsub.f32 %v389_v28, %v349_v20  ;;  %v64_v52 = vsub.f32 %v394_v29, %v347_v19  ;;  %v161_v56 = vsub.f32 %v399_v30, %v349_v20  ;;  %v501_v61 = vld [vmem:[%s769_s0 + $0x60] sm:$0xff]  ;;  %v529_v6 = vld [vmem:[%s769_s0 + $0x70] sm:$0xff]  ;;  %v545_v12 = vld [vmem:[%s769_s0 + $0x78] sm:$0xff] }
   0xc   :  { %v53_v13 = vadd.f32 1e-05, %v52_v10  ;;  %v65_v57 = vsub.f32 %v404_v31, %v347_v19  ;;  %v162_v58 = vsub.f32 %v409_v32, %v349_v20  ;;  %v66_v59 = vsub.f32 %v424_v38, %v347_v19  ;;  %v506_v62 = vld [vmem:[%s770_s4 + $0x60] sm:$0xff]  ;;  %v540_v11 = vld [vmem:[%s770_s4 + $0x70] sm:$0xff] }
   0xd   :  { %v150_v15 = vadd.f32 1e-05, %v149_v14  ;;  %v163_v0 = vsub.f32 %v429_v39, %v349_v20  ;;  %v67_v1 = vsub.f32 %v434_v40, %v347_v19  ;;  %v164_v2 = vsub.f32 %v447_v45, %v349_v20  ;;  %v569_v29 = vld [vmem:[%s773_s3] ss:$0 sm:$0xff] }
   0xe   :  { %279 = vrsqrt.f32 %v53_v13  ;;  %v68_v3 = vsub.f32 %v452_v46, %v347_v19  ;;  %v165_v8 = vsub.f32 %v457_v47, %v349_v20  ;;  %v69_v9 = vsub.f32 %v473_v53, %v347_v19  ;;  %v550_v13 = vld [vmem:[%s770_s4 + $0x78] sm:$0xff]  ;;  %v587_v30 = vld [vmem:[%s774_s7] ss:$0 sm:$0xff] }
   0xf   :  { %281 = vrsqrt.f32 %v150_v15  ;;  %v166_v10 = vsub.f32 %v478_v54, %v349_v20  ;;  %v70_v15 = vsub.f32 %v483_v55, %v347_v19  ;;  %v167_v16 = vsub.f32 %v496_v60, %v349_v20 }
  0x10   :  { %v71_v17 = vsub.f32 %v501_v61, %v347_v19  ;;  %v168_v21 = vsub.f32 %v506_v62, %v349_v20 }
  0x1b   :  { %v280_v63 = vpop.eup %279 }
  0x1c   :  { %v82_v7 = vmul.f32 %v280_v63, %v275_v34  ;;  %v282_v14 = vpop.eup %281 }
  0x1d   :  { %v179_v25 = vmul.f32 %v282_v14, %v277_v48 }
  0x1e   :  { %v560_v23 = vrot.slane %v82_v7, %v85_v35 }
  0x1f   :  { %v580_v7 = vrot.slane %v179_v25, %v85_v35 }
  0x20   :  { %v87_v63 = vmul.f32 %v560_v23, %v59_v33  ;;  %v88_v14 = vmul.f32 %v560_v23, %v60_v37  ;;  %v89_v27 = vmul.f32 %v560_v23, %v61_v42  ;;  %v90_v31 = vmul.f32 %v560_v23, %v62_v44 }
  0x21   :  { %v91_v34 = vmul.f32 %v560_v23, %v63_v50  ;;  %v92_v26 = vmul.f32 %v560_v23, %v64_v52  ;;  %v93_v48 = vmul.f32 %v560_v23, %v65_v57  ;;  %v184_v35 = vmul.f32 %v580_v7, %v156_v36 }
  0x22   :  { %v110_v33 = vadd.f32 %v569_v29, %v87_v63  ;;  %v111_v37 = vadd.f32 %v569_v29, %v88_v14  ;;  %v185_v42 = vmul.f32 %v580_v7, %v157_v41  ;;  %v112_v44 = vadd.f32 %v569_v29, %v89_v27 }
  0x23   :  { %v186_v50 = vmul.f32 %v580_v7, %v158_v43  ;;  %v113_v52 = vadd.f32 %v569_v29, %v90_v31  ;;  %v187_v18 = vmul.f32 %v580_v7, %v159_v49  ;;  %v207_v36 = vadd.f32 %v587_v30, %v184_v35 }
  0x24   :  { %v208_v57 = vadd.f32 %v587_v30, %v185_v42  ;;  %v114_v25 = vadd.f32 %v569_v29, %v91_v34  ;;  %v188_v22 = vmul.f32 %v580_v7, %v160_v51  ;;  %v115_v43 = vadd.f32 %v569_v29, %v92_v26 }
  0x25   :  { %v209_v41 = vadd.f32 %v587_v30, %v186_v50  ;;  %v210_v24 = vadd.f32 %v587_v30, %v187_v18  ;;  %v189_v27 = vmul.f32 %v580_v7, %v161_v56  ;;  %v223_v49 = vadd.f32 %v207_v36, %v110_v33 }
  0x26   :  { %v224_v31 = vadd.f32 %v208_v57, %v111_v37  ;;  %v211_v63 = vadd.f32 %v587_v30, %v188_v22  ;;  %v116_v14 = vadd.f32 %v569_v29, %v93_v48  ;;  %v190_v51 = vmul.f32 %v580_v7, %v162_v58 }
  0x27   :  { %v225_v34 = vadd.f32 %v209_v41, %v112_v44  ;;  %v226_v35 = vadd.f32 %v210_v24, %v113_v52  ;;  %v212_v28 = vadd.f32 %v587_v30, %v189_v27  ;;  %v239_v42 = vmax.f32 %v223_v49, 0.0 }
  0x28   :  { %v240_v50 = vmax.f32 %v224_v31, 0.0  ;;  %v227_v26 = vadd.f32 %v211_v63, %v114_v25  ;;  %v94_v56 = vmul.f32 %v560_v23, %v66_v59  ;;  %v213_v44 = vadd.f32 %v587_v30, %v190_v51 }
  0x29   :  { %v241_v33 = vmax.f32 %v225_v34, 0.0  ;;  %v242_v37 = vmax.f32 %v226_v35, 0.0  ;;  %v228_v48 = vadd.f32 %v212_v28, %v115_v43  ;;  %255 = vst [vmem:[%s775_s8] sm:$0xff] %v239_v42  ;;  %v191_v38 = vmul.f32 %v580_v7, %v163_v0 }
  0x2a   :  { %256 = vst [vmem:[%s775_s8 + $0x8] sm:$0xff] %v240_v50  ;;  %v243_v32 = vmax.f32 %v227_v26, 0.0  ;;  %v117_v58 = vadd.f32 %v569_v29, %v94_v56  ;;  %v95_v59 = vmul.f32 %v560_v23, %v67_v1  ;;  %v229_v18 = vadd.f32 %v213_v44, %v116_v14 }
  0x2b   :  { %257 = vst [vmem:[%s775_s8 + $0x10] sm:$0xff] %v241_v33  ;;  %258 = vst [vmem:[%s775_s8 + $0x18] sm:$0xff] %v242_v37  ;;  %v244_v52 = vmax.f32 %v228_v48, 0.0  ;;  %v192_v39 = vmul.f32 %v580_v7, %v164_v2  ;;  %v96_v40 = vmul.f32 %v560_v23, %v68_v3  ;;  %v214_v0 = vadd.f32 %v587_v30, %v191_v38 }
  0x2c   :  { %259 = vst [vmem:[%s775_s8 + $0x20] sm:$0xff] %v243_v32  ;;  %v118_v1 = vadd.f32 %v569_v29, %v95_v59  ;;  %v193_v45 = vmul.f32 %v580_v7, %v165_v8  ;;  %v97_v46 = vmul.f32 %v560_v23, %v69_v9  ;;  %v245_v2 = vmax.f32 %v229_v18, 0.0 }
  0x2d   :  { %260 = vst [vmem:[%s775_s8 + $0x28] sm:$0xff] %v244_v52  ;;  %v215_v3 = vadd.f32 %v587_v30, %v192_v39  ;;  %v119_v36 = vadd.f32 %v569_v29, %v96_v40  ;;  %v194_v47 = vmul.f32 %v580_v7, %v166_v10  ;;  %v230_v8 = vadd.f32 %v214_v0, %v117_v58 }
  0x2e   :  { %v216_v57 = vadd.f32 %v587_v30, %v193_v45  ;;  %v120_v53 = vadd.f32 %v569_v29, %v97_v46  ;;  %v98_v9 = vmul.f32 %v560_v23, %v70_v15  ;;  %261 = vst [vmem:[%s775_s8 + $0x30] sm:$0xff] %v245_v2  ;;  %v195_v54 = vmul.f32 %v580_v7, %v167_v16 }
  0x2f   :  { %v231_v25 = vadd.f32 %v215_v3, %v118_v1  ;;  %v217_v22 = vadd.f32 %v587_v30, %v194_v47  ;;  %v99_v10 = vmul.f32 %v560_v23, %v71_v17  ;;  %v246_v55 = vmax.f32 %v230_v8, 0.0 }
  0x30   :  { %v232_v41 = vadd.f32 %v216_v57, %v119_v36  ;;  %v121_v15 = vadd.f32 %v569_v29, %v98_v9  ;;  %v196_v24 = vmul.f32 %v580_v7, %v168_v21  ;;  %v218_v60 = vadd.f32 %v587_v30, %v195_v54 }
  0x31   :  { %v247_v43 = vmax.f32 %v231_v25, 0.0  ;;  %v233_v27 = vadd.f32 %v217_v22, %v120_v53  ;;  %v122_v16 = vadd.f32 %v569_v29, %v99_v10  ;;  %262 = vst [vmem:[%s775_s8 + $0x38] sm:$0xff] %v246_v55  ;;  %v776_v49 = vsub.f32 %v519_v4, %v347_v19 }
  0x32   :  { %v248_v61 = vmax.f32 %v232_v41, 0.0  ;;  %v219_v17 = vadd.f32 %v587_v30, %v196_v24  ;;  %v777_v21 = vsub.f32 %v524_v5, %v349_v20  ;;  %v234_v14 = vadd.f32 %v218_v60, %v121_v15 }
  0x33   :  { %v100_v62 = vmul.f32 %v560_v23, %v776_v49  ;;  %263 = vst [vmem:[%s775_s8 + $0x40] sm:$0xff] %v247_v43  ;;  %v249_v63 = vmax.f32 %v233_v27, 0.0  ;;  %v778_v34 = vsub.f32 %v529_v6, %v347_v19  ;;  %v779_v4 = vsub.f32 %v540_v11, %v349_v20 }
  0x34   :  { %v197_v31 = vmul.f32 %v580_v7, %v777_v21  ;;  %264 = vst [vmem:[%s775_s8 + $0x48] sm:$0xff] %v248_v61  ;;  %v235_v5 = vadd.f32 %v219_v17, %v122_v16  ;;  %v780_v50 = vsub.f32 %v545_v12, %v347_v19  ;;  %v250_v11 = vmax.f32 %v234_v14, 0.0 }
  0x35   :  { %v101_v35 = vmul.f32 %v560_v23, %v778_v34  ;;  %v198_v28 = vmul.f32 %v580_v7, %v779_v4  ;;  %v123_v51 = vadd.f32 %v569_v29, %v100_v62  ;;  %265 = vst [vmem:[%s775_s8 + $0x50] sm:$0xff] %v249_v63  ;;  %v781_v33 = vsub.f32 %v550_v13, %v349_v20 }
  0x36   :  { %v220_v42 = vadd.f32 %v587_v30, %v197_v31  ;;  %v102_v6 = vmul.f32 %v560_v23, %v780_v50  ;;  %v251_v48 = vmax.f32 %v235_v5, 0.0  ;;  %266 = vst [vmem:[%s775_s8 + $0x58] sm:$0xff] %v250_v11 }
  0x37   :  { %v124_v26 = vadd.f32 %v569_v29, %v101_v35  ;;  %v221_v56 = vadd.f32 %v587_v30, %v198_v28  ;;  %v199_v37 = vmul.f32 %v580_v7, %v781_v33 }
  0x38   :  { %v236_v44 = vadd.f32 %v220_v42, %v123_v51  ;;  %v125_v19 = vadd.f32 %v569_v29, %v102_v6  ;;  %267 = vst [vmem:[%s775_s8 + $0x60] sm:$0xff] %v251_v48 }
  0x39   :  { %v237_v12 = vadd.f32 %v221_v56, %v124_v26  ;;  %v222_v23 = vadd.f32 %v587_v30, %v199_v37 }
  0x3a   :  { %v252_v32 = vmax.f32 %v236_v44, 0.0 }
  0x3b   :  { %v253_v58 = vmax.f32 %v237_v12, 0.0  ;;  %v238_v20 = vadd.f32 %v222_v23, %v125_v19 }
  0x3c   :  { %268 = vst [vmem:[%s775_s8 + $0x68] sm:$0xff] %v252_v32 }
  0x3d   :  { %269 = vst [vmem:[%s775_s8 + $0x70] sm:$0xff] %v253_v58  ;;  %v254_v13 = vmax.f32 %v238_v20, 0.0 }
  0x3f   :  { %270 = vst [vmem:[%s775_s8 + $0x78] sm:$0xff] %v254_v13 }

</bundles_post_ra>
